<compile_context>
chip_gen: v7x
topology: tpu7x:2x2x1
jax: 0.10.0
libtpu: 0.0.40
codegen_flags: <defaults>
</compile_context>

<pallas_src>
import functools

import jax
import jax.numpy as jnp
from jax.experimental import pallas as pl
from jax.experimental.pallas import tpu as pltpu


def _pool_attn_kernel(x_ref, w_ref, y_ref, acc_ref, *, c, hw, tile, k):
    """Grid (B, HW_tiles): accumulate spatial sum; on last tile apply the
    k-tap channel conv + sigmoid.

    x_ref  : (1, C, T)           current spatial tile of x
    w_ref  : (K, 1) f32          conv1d taps
    y_ref  : (1, C, 1) f32       attention weights (written on last tile)
    acc_ref: (C + 2*half, 1) f32 scratch, zero rows at both channel ends
    """
    half = k // 2
    t = pl.program_id(1)
    n_t = pl.num_programs(1)

    @pl.when(t == 0)
    def _init():
        acc_ref[...] = jnp.zeros_like(acc_ref)

    x = x_ref[0].astype(jnp.float32)                         # (C, T)
    if hw % tile != 0:
        # Mask padded lanes of the final partial spatial tile.
        lane = jax.lax.broadcasted_iota(jnp.int32, x.shape, 1)
        x = jnp.where(lane + t * tile < hw, x, 0.0)
    acc_ref[half:half + c, :] += jnp.sum(x, axis=-1, keepdims=True)

    @pl.when(t == n_t - 1)
    def _finalize():
        # conv[ch] = sum_j w[j] * pooled[ch + j - half]; the zero padding at
        # the channel boundaries comes from the untouched scratch rows.
        conv = w_ref[0:1, :] * acc_ref[0:c, :]
        for j in range(1, k):
            conv = conv + w_ref[j:j + 1, :] * acc_ref[j:j + c, :]
        conv = conv * jnp.float32(1.0 / hw)                  # sum -> mean
        y_ref[0] = jax.nn.sigmoid(conv)


def _scale_kernel(x_ref, y_ref, out_ref):
    """Grid (B, HW_tiles): out = x * y, broadcast over the spatial axis.

    x_ref  : (1, C, T) native dtype
    y_ref  : (1, C, 1) f32
    out_ref: (1, C, T) native dtype
    """
    x = x_ref[0]                                             # (C, T)
    y = y_ref[0].astype(x.dtype)                             # (C, 1)
    out_ref[0] = (x * y).astype(out_ref.dtype)


def _choose_hw_tile(c, hw, itemsize):
    """Largest lane-aligned spatial tile with <= ~4 MiB (C, T) footprint."""
    budget = 4 * 1024 * 1024
    max_t = max(128, budget // max(1, c * itemsize))
    if hw <= max_t:
        return hw                      # full spatial extent in one block
    return max(128, (max_t // 128) * 128)


def eca_forward(x, conv_weight):
    """x: (B, C, H, W); conv_weight: (k,) conv1d taps. Returns (x * y, y)."""
    B, C, H, W = x.shape
    HW = H * W
    K = int(conv_weight.shape[0])
    half = K // 2
    itemsize = jnp.dtype(x.dtype).itemsize

    x_flat = x.reshape(B, C, HW)
    w = conv_weight.astype(jnp.float32).reshape(K, 1)

    T = _choose_hw_tile(C, HW, itemsize)
    n_t = pl.cdiv(HW, T)

    # Pass 1: global average pool + channel conv + sigmoid -> y (B, C, 1) f32.
    y = pl.pallas_call(
        functools.partial(_pool_attn_kernel, c=C, hw=HW, tile=T, k=K),
        out_shape=jax.ShapeDtypeStruct((B, C, 1), jnp.float32),
        grid_spec=pltpu.PrefetchScalarGridSpec(
            num_scalar_prefetch=0,
            grid=(B, n_t),
            in_specs=[
                pl.BlockSpec((1, C, T), lambda b, t: (b, 0, t)),
                pl.BlockSpec((K, 1), lambda b, t: (0, 0)),
            ],
            out_specs=pl.BlockSpec((1, C, 1), lambda b, t: (b, 0, 0)),
            scratch_shapes=[pltpu.VMEM((C + 2 * half, 1), jnp.float32)],
        ),
        compiler_params=pltpu.CompilerParams(
            dimension_semantics=("parallel", "arbitrary"),
            vmem_limit_bytes=32 * 1024 * 1024,
        ),
        cost_estimate=pl.CostEstimate(
            flops=B * C * (HW + 2 * K),
            transcendentals=B * C,
            bytes_accessed=B * C * HW * itemsize + B * C * 4 + K * 4,
        ),
    )(x_flat, w)

    # Pass 2: purely elementwise broadcast multiply, tiled over (B, HW).
    out_flat = pl.pallas_call(
        _scale_kernel,
        out_shape=jax.ShapeDtypeStruct((B, C, HW), x.dtype),
        grid_spec=pltpu.PrefetchScalarGridSpec(
            num_scalar_prefetch=0,
            grid=(B, n_t),
            in_specs=[
                pl.BlockSpec((1, C, T), lambda b, t: (b, 0, t)),
                pl.BlockSpec((1, C, 1), lambda b, t: (b, 0, 0)),
            ],
            out_specs=pl.BlockSpec((1, C, T), lambda b, t: (b, 0, t)),
        ),
        compiler_params=pltpu.CompilerParams(
            dimension_semantics=("parallel", "parallel"),
            vmem_limit_bytes=32 * 1024 * 1024,
        ),
        cost_estimate=pl.CostEstimate(
            flops=B * C * HW,
            transcendentals=0,
            bytes_accessed=2 * B * C * HW * itemsize + B * C * 4,
        ),
    )(x_flat, y)

    out = out_flat.reshape(B, C, H, W)
    return out, y.astype(x.dtype).reshape(B, C, 1, 1)


def _eca_reference(x, conv_weight):
    """Pure-JAX reference mirroring the PyTorch forward (k = 3)."""
    B, C, H, W = x.shape
    pooled = jnp.mean(x, axis=(2, 3))                        # (B, C)
    padded = jnp.pad(pooled, ((0, 0), (1, 1)))               # (B, C+2)
    y = (conv_weight[0] * padded[:, :-2]
         + conv_weight[1] * padded[:, 1:-1]
         + conv_weight[2] * padded[:, 2:])                   # (B, C)
    y = jax.nn.sigmoid(y).reshape(B, C, 1, 1)
    return x * y, y


if __name__ == "__main__":
    B, C, H, W = 2, 4, 16, 16
    key = jax.random.PRNGKey(0)
    kx, kw = jax.random.split(key)
    x = jax.random.normal(kx, (B, C, H, W), dtype=jnp.float32)
    # Conv1d weight of shape (out=1, in=1, k=3), flattened to (3,).
    conv_weight = jax.random.normal(kw, (3,), dtype=jnp.float32) * 0.5

    out, y = eca_forward(x, conv_weight)
    out = jax.block_until_ready(out)
    y = jax.block_until_ready(y)

    ref_out, ref_y = _eca_reference(x, conv_weight)
    assert out.shape == (B, C, H, W) and y.shape == (B, C, 1, 1)
    assert jnp.allclose(out, ref_out, atol=1e-5, rtol=1e-5), "output mismatch"
    assert jnp.allclose(y, ref_y, atol=1e-5, rtol=1e-5), "attention mismatch"

    print("KERNEL_OK")
</pallas_src>

<mosaic_0001>
module attributes {stable_mosaic.version = 11 : i64} {
  func.func @_pool_attn_kernel(%arg0: i32, %arg1: i32, %arg2: memref<1x4x256xf32, #tpu.memory_space<vmem>>, %arg3: memref<3x1xf32, #tpu.memory_space<vmem>>, %arg4: memref<1x4x1xf32, #tpu.memory_space<vmem>>, %arg5: memref<6x1xf32, #tpu.memory_space<vmem>>) attributes {dimension_semantics = [#tpu.dimension_semantics<parallel>, #tpu.dimension_semantics<arbitrary>], iteration_bounds = array<i64: 2, 1>, scalar_prefetch = 0 : i64, scratch_operands = 1 : i64, tpu.core_type = #tpu.core_type<tc>, window_params = [{transform_indices = @transform_0, window_bounds = array<i64: 1, 4, 256>}, {pipeline_mode = #tpu.pipeline_mode<synchronous>, transform_indices = @transform_1, window_bounds = array<i64: 3, 1>}, {transform_indices = @transform_2, window_bounds = array<i64: 1, 4, 1>}]} {
    %c0_i32 = arith.constant 0 : i32
    %0 = arith.cmpi eq, %arg1, %c0_i32 : i32
    %1 = arith.extui %0 : i1 to i32
    %c0_i32_0 = arith.constant 0 : i32
    %2 = arith.cmpi ne, %1, %c0_i32_0 : i32
    scf.if %2 {
      %cst_8 = arith.constant 0.000000e+00 : f32
      %13 = vector.broadcast %cst_8 : f32 to vector<6x1xf32>
      %c0_9 = arith.constant 0 : index
      %c0_10 = arith.constant 0 : index
      %14 = vector.load %arg5[%c0_9, %c0_10] : memref<6x1xf32, #tpu.memory_space<vmem>>, vector<6x1xf32>
      tpu.vector_store %arg5[%c0_9, %c0_10], %13 {strides = array<i32>} : memref<6x1xf32, #tpu.memory_space<vmem>>, vector<6x1xf32>,
    } else {
    }
    %c0 = arith.constant 0 : index
    %c0_1 = arith.constant 0 : index
    %c0_2 = arith.constant 0 : index
    %3 = vector.load %arg2[%c0, %c0_1, %c0_2] : memref<1x4x256xf32, #tpu.memory_space<vmem>>, vector<1x4x256xf32>
    %4 = vector.shape_cast %3 : vector<1x4x256xf32> to vector<4x256xf32>
    %c1 = arith.constant 1 : index
    %c0_3 = arith.constant 0 : index
    %5 = vector.load %arg5[%c1, %c0_3] : memref<6x1xf32, #tpu.memory_space<vmem>>, vector<4x1xf32>
    %cst = arith.constant dense<0.000000e+00> : vector<4xf32>
    %6 = vector.multi_reduction <add>, %4, %cst [1] : vector<4x256xf32> to vector<4xf32>
    %7 = vector.shape_cast %6 : vector<4xf32> to vector<4x1xf32>
    %8 = arith.addf %5, %7 : vector<4x1xf32>
    %c1_4 = arith.constant 1 : index
    %c0_5 = arith.constant 0 : index
    %9 = vector.load %arg5[%c1_4, %c0_5] : memref<6x1xf32, #tpu.memory_space<vmem>>, vector<4x1xf32>
    tpu.vector_store %arg5[%c1_4, %c0_5], %8 {strides = array<i32>} : memref<6x1xf32, #tpu.memory_space<vmem>>, vector<4x1xf32>,
    %c0_i32_6 = arith.constant 0 : i32
    %10 = arith.cmpi eq, %arg1, %c0_i32_6 : i32
    %11 = arith.extui %10 : i1 to i32
    %c0_i32_7 = arith.constant 0 : i32
    %12 = arith.cmpi ne, %11, %c0_i32_7 : i32
    scf.if %12 {
      %c0_8 = arith.constant 0 : index
      %c0_9 = arith.constant 0 : index
      %13 = vector.load %arg3[%c0_8, %c0_9] : memref<3x1xf32, #tpu.memory_space<vmem>>, vector<1x1xf32>
      %c0_10 = arith.constant 0 : index
      %c0_11 = arith.constant 0 : index
      %14 = vector.load %arg5[%c0_10, %c0_11] : memref<6x1xf32, #tpu.memory_space<vmem>>, vector<4x1xf32>
      %15 = vector.broadcast %13 : vector<1x1xf32> to vector<4x1xf32>
      %16 = arith.mulf %15, %14 : vector<4x1xf32>
      %c1_12 = arith.constant 1 : index
      %c0_13 = arith.constant 0 : index
      %17 = vector.load %arg3[%c1_12, %c0_13] : memref<3x1xf32, #tpu.memory_space<vmem>>, vector<1x1xf32>
      %c1_14 = arith.constant 1 : index
      %c0_15 = arith.constant 0 : index
      %18 = vector.load %arg5[%c1_14, %c0_15] : memref<6x1xf32, #tpu.memory_space<vmem>>, vector<4x1xf32>
      %19 = vector.broadcast %17 : vector<1x1xf32> to vector<4x1xf32>
      %20 = arith.mulf %19, %18 : vector<4x1xf32>
      %21 = arith.addf %16, %20 : vector<4x1xf32>
      %c2 = arith.constant 2 : index
      %c0_16 = arith.constant 0 : index
      %22 = vector.load %arg3[%c2, %c0_16] : memref<3x1xf32, #tpu.memory_space<vmem>>, vector<1x1xf32>
      %c2_17 = arith.constant 2 : index
      %c0_18 = arith.constant 0 : index
      %23 = vector.load %arg5[%c2_17, %c0_18] : memref<6x1xf32, #tpu.memory_space<vmem>>, vector<4x1xf32>
      %24 = vector.broadcast %22 : vector<1x1xf32> to vector<4x1xf32>
      %25 = arith.mulf %24, %23 : vector<4x1xf32>
      %26 = arith.addf %21, %25 : vector<4x1xf32>
      %cst_19 = arith.constant 3.906250e-03 : f32
      %27 = vector.broadcast %cst_19 : f32 to vector<4x1xf32>
      %28 = arith.mulf %26, %27 : vector<4x1xf32>
      %29 = arith.negf %28 : vector<4x1xf32>
      %30 = math.exp %29 : vector<4x1xf32>
      %cst_20 = arith.constant 1.000000e+00 : f32
      %31 = vector.broadcast %cst_20 : f32 to vector<4x1xf32>
      %32 = arith.addf %31, %30 : vector<4x1xf32>
      %33 = arith.divf %31, %32 : vector<4x1xf32>
      %c0_21 = arith.constant 0 : index
      %c0_22 = arith.constant 0 : index
      %c0_23 = arith.constant 0 : index
      %34 = vector.load %arg4[%c0_21, %c0_22, %c0_23] : memref<1x4x1xf32, #tpu.memory_space<vmem>>, vector<1x4x1xf32>
      %35 = vector.shape_cast %34 : vector<1x4x1xf32> to vector<4x1xf32>
      %36 = vector.shape_cast %33 : vector<4x1xf32> to vector<1x4x1xf32>
      tpu.vector_store %arg4[%c0_21, %c0_22, %c0_23], %36 {strides = array<i32>} : memref<1x4x1xf32, #tpu.memory_space<vmem>>, vector<1x4x1xf32>,
    } else {
    }
    return
  }
  func.func @transform_0(%arg0: i32, %arg1: i32) -> (i32, i32, i32) {
    %c0_i32 = arith.constant 0 : i32
    %c0_i32_0 = arith.constant 0 : i32
    return %arg0, %c0_i32, %arg1 : i32, i32, i32
  }
  func.func @transform_1(%arg0: i32, %arg1: i32) -> (i32, i32) {
    %c0_i32 = arith.constant 0 : i32
    %c0_i32_0 = arith.constant 0 : i32
    %c0_i32_1 = arith.constant 0 : i32
    return %c0_i32, %c0_i32_0 : i32, i32
  }
  func.func @transform_2(%arg0: i32, %arg1: i32) -> (i32, i32, i32) {
    %c0_i32 = arith.constant 0 : i32
    %c0_i32_0 = arith.constant 0 : i32
    %c0_i32_1 = arith.constant 0 : i32
    return %arg0, %c0_i32, %c0_i32_0 : i32, i32, i32
  }
}

</mosaic_0001>

<bundles_post_ra>
// kernel: tpu_custom_call.1
= control target key start
LH: loop header
LB: loop body
LE: loop exit
PB: predicated region body
PF: predicated region fallthrough
CT: control target
= control target key end

     0   :  { %7 = vsyncpa [#allocation4], 0  ;;  %s620_s0 = inlined_call_operand.hbm [shape: f32[2,4,256], index: 0, kind: input, shape index: {}]   ;;  %s621_s1 = inlined_call_operand.vmem [shape: f32[3,1], index: 1, kind: input, shape index: {}]   ;;  %s622_s2 = inlined_call_operand.vmem [shape: f32[2,4,1], index: 2, kind: output, shape index: {}]  }
   0x1   :  { %9 = vsyncpa [#allocation4 + $0x1], 0  ;;  %s484_s9 = smov 0   ;;  %s486_s10 = smov 0  }
   0x2   :  { %s488_s11 = smov 0   ;;  %s490_s12 = smov 0  }
   0x3   :  { %s492_s13 = smov 0   ;;  %s494_s14 = smov 0  }
   0x4 LB: > { %s307_s15 = sadd.s32 4294967295, %s465_s14   ;;  %s27_s16 = sadd.s32 1, %s461_s13  ;;  %s465_s14 = sphi %s494_s14, %s15_s14   ;;  %s461_s13 = sphi %s492_s13, %s632_s13   ;;  %s457_s12 = sphi %s490_s12, %s631_s12   ;;  %s453_s11 = sphi %s488_s11, %s630_s11   ;;  %s449_s10 = sphi %s486_s10, %s629_s10   ;;  %s445_s9 = sphi %s484_s9, %s628_s9  }
   0x5   : > { %p29_p0 = scmp.ge.s32.totalorder %s27_s16, 2  ;;  %s36_s17 = sadd.s32 1, %s453_s11 }
   0x6   : > { %p43_p1 = scmp.ne.s32.totalorder %s453_s11, %s449_s10  ;;  %p44_p2 = scmp.eq.s32.totalorder %s465_s14, 0 }
   0x7   : > { %s634_s16 = smov (%p29_p0, %s27_s16), 0  ;;  %p49_p4 = scmp.ne.s32.totalorder %s449_s10, %s445_s9 }
   0x8   : > { %p520_p3 = por %p44_p2, %p43_p1  ;;  %s31_s19 = ssub.s32 %s461_s13, %s634_s16 }
   0x9   : > { %p50_p5 = scmp.eq.s32.totalorder %s307_s15, 0  ;;  %p34_p6 = scmp.eq.s32.totalorder %s31_s19, 0 }
   0xa   : > { %p330_p8 = scmp.lt.s32.totalorder %s465_s14, 2  ;;  %s123_s22 = sand.u32 1, %s453_s11  }
   0xb   : > { %p527_p7 = por %p50_p5, %p49_p4  ;;  %s323_s23 = sshll.u32 %s461_s13, 7 }
   0xc   : > { %s533_s21 = scalar_select %p34_p6, %s453_s11, %s36_s17  }
   0xd   : > { %s311_s24 = sshll.u32 %s123_s22, 3  ;;  %s540_s27 = scalar_lea.hbm %s620_s0, %s323_s23 }
   0xe   : > { %s127_s28 = scalar_lea.vmem [#allocation3], %s311_s24  ;;  %p544_p9 = pnand %p330_p8, %p520_p3 }
   0xf   : > { %s137_s29 = sshll.u32 %s127_s28, 4  ;;  %s124_s3 = scalar_lea.sflag [#allocation4], %s123_s22  ;;  %s548_s29 = int_to_ptr.vmem [resolvable:$true] %s137_s29 }
  0x10   : > { %s385_s4 = scalar_lea.hbm %s540_s27, 128  ;;  %p387_p13 = pneg %p544_p9 }
  0x11   : > { %p386_p12 = scmp.ne.s32.totalorder %s540_s27, %s385_s4  ;;  %s390_s7 = scalar_lea.hbm %s620_s0, 256 }
  0x12   : > { %p391_p2 = scmp.lt.u32.totalorder %s540_s27, %s620_s0  ;;  %p392_p3 = scmp.lt.u32.totalorder %s390_s7, %s385_s4 }
  0x13   : > { %p388_p0 = pnand %p387_p13, %p386_p12  ;;  %p394_p5 = scmp.lt.u32.totalorder %s385_s4, %s540_s27 }
  0x14   : > { %p393_p4 = por %p392_p3, %p391_p2 }
  0x15   : > { %p389_p1 = pneg %p388_p0 }
  0x16   : > { %p395_p6 = por %p394_p5, %p393_p4 }
  0x18   : > { %p396_p8 = pnand %p395_p6, %p389_p1 }
  0x1a   : > { %399 = shalt.err (!%p396_p8)
}
  0x1b   : > { %s400_s15 = scalar_lea.vmem %s548_s29, 128  ;;  %s467_s17 = smov [#allocation3]  }
  0x1c   : > { %p401_p12 = scmp.ne.s32.totalorder %s548_s29, %s400_s15  ;;  %s405_s18 = sshll.u32 %s467_s17, 4  ;;  %s406_s18 = int_to_ptr.vmem [resolvable:$false] %s405_s18 }
  0x1d   : > { %s407_s19 = scalar_lea.vmem %s406_s18, 256  ;;  %p408_p11 = scmp.lt.s32.totalorder %s548_s29, %s406_s18 }
  0x1e   : > { %p403_p0 = pnand %p401_p12, %p387_p13  ;;  %p409_p2 = scmp.lt.s32.totalorder %s407_s19, %s400_s15 }
  0x20   : > { %p404_p10 = pneg %p403_p0  ;;  %p410_p3 = por %p409_p2, %p408_p11 }
  0x22   : > { %p411_p4 = pnand %p410_p3, %p404_p10 }
  0x24   : > { %414 = shalt.err (!%p411_p4)
}
  0x25   : > { %329 = dma.hbm_to_vmem [thread:$0]  (!%p544_p9), %s540_s27, 128, %s548_s29, %s124_s3  }
  0x26   : > { %p626_p1 = scmp.lt.s32.totalorder %s465_s14, 3  ;;  %p627_p5 = scmp.ge.s32.totalorder %s465_s14, 1 }
  0x28   : > { %p143_p13 = pnand %p627_p5, %p626_p1 }
  0x29   : > { %s148_s22 = sand.u32 (!%p143_p13), 1, %s449_s10  }
  0x2a   : > { %146 = sbr.rel (%p143_p13) target bundleno = 244 (0xf4), region = 28  ;;  %s315_s23 = sshll.u32 (!%p143_p13), %s148_s22, 3 }
  0x2b   : > { %s149_s24 = scalar_lea.sflag (!%p143_p13), [#allocation4], %s148_s22  ;;  %s152_s25 = scalar_lea.vmem (!%p143_p13), [#allocation3], %s315_s23 }
  0x31   : > { %440 = dma.done.wait (%p527_p7), %s149_s24, 128  }
  0x32   : > { %442 = vsyncadd (%p527_p7), %s149_s24, 4294967168  ;;  %vm181_vm0 = vcmask 5120   ;;  %v468_v0 = vmov 0.0   ;;  %vm188_vm1 = vcmask 1043456   ;;  %v183_v1 = vld [vmem:[%s152_s25] sm:$0xff]  ;;  %vm195_vm2 = vcmask 3072  }
  0x33   : > { %182 = vst.msk [vmem:[#allocation2] sm:$0x3f] %vm181_vm0, %v468_v0  ;;  %v186_v2 = vcombine.high %v183_v1, %v183_v1  ;;  %v189_v3 = vsel %vm188_vm1, %v183_v1, 0.0  ;;  %v317_v9 = vld [vmem:[%s621_s1] ss:$0 sm:$0xff]  ;;  %p173_p7 = scmp.lt.s32.totalorder %s457_s12, 1 }
  0x34   : > { %v318_v10 = vld [vmem:[%s621_s1 + $0x1] ss:$0 sm:$0xff]  ;;  %v319_v11 = vld [vmem:[%s621_s1 + $0x2] ss:$0 sm:$0xff] }
  0x35   : > { %v190_v4 = vsel %vm188_vm1, %v186_v2, 0.0  ;;  %s636_s12 = smov (!%p173_p7, %s457_s12), 1 }
  0x36   : > { %v191_v5 = vadd.f32 %v190_v4, %v189_v3  ;;  %s316_s3 = sshll.u32 %s636_s12, 2 }
  0x37   : > { %s176_s6 = scalar_lea.vmem %s622_s2, %s316_s3 }
  0x38   : > { %192 = vadd.xlane.f32.xlu0 %v191_v5 }
  0x3a   : > { %v184_v6 = vld [vmem:[#allocation2 + $0x1] sm:$0xf] }
  0xc5   : > { %v193_v7 = vpop.xlane.xlu0 %192 }
  0xc6   : > { %v194_v8 = vadd.f32 %v193_v7, %v184_v6 }
  0xc8   : > { %196 = vst.msk [vmem:[#allocation2 + $0x1] sm:$0xf] %vm195_vm2, %v194_v8 }
  0xcf   : > { %v201_v12 = vld [vmem:[#allocation2] sm:$0xf] }
  0xd0   : > { %v208_v13 = vld [vmem:[#allocation2 + $0x1] sm:$0xf]  ;;  %v206_v15 = vmul.f32 %v317_v9, %v201_v12 }
  0xd1   : > { %v216_v14 = vld [vmem:[#allocation2 + $0x2] sm:$0xf]  ;;  %v213_v16 = vmul.f32 %v318_v10, %v208_v13 }
  0xd2   : > { %v221_v18 = vmul.f32 %v319_v11, %v216_v14 }
  0xd3   : > { %v214_v17 = vadd.f32 %v213_v16, %v206_v15 }
  0xd5   : > { %v222_v19 = vadd.f32 %v221_v18, %v214_v17 }
  0xd7   : > { %v320_v20 = vmul.f32 -0.00390625, %v222_v19 }
  0xd9   : > { %v225_v21 = vmul.f32 1.442695, %v320_v20 }
  0xdb   : > { %381 = vpow2.f32 %v225_v21 }
  0xe5   : > { %v382_v22 = vpop.eup %381 }
  0xe6   : > { %v227_v23 = vadd.f32 1.0, %v382_v22 }
  0xe8   : > { %383 = vrcp.f32 %v227_v23 }
  0xf2   : > { %v384_v24 = vpop.eup %383 }
  0xf3   : > { %230 = vst.msk [vmem:[%s176_s6] sm:$0xf] %vm195_vm2, %v384_v24 }
  0xf4 PF: > { %s15_s14 = sadd.s32 1, %s465_s14   ;;  %s628_s9 = smov %s449_s10 }
  0xf5   : > { %p12_p9 = scmp.ge.s32.totalorder %s15_s14, 4   ;;  %s629_s10 = smov %s453_s11 }
  0xf6   : > { %s630_s11 = smov %s533_s21  ;;  %s631_s12 = smov %s461_s13 }
  0xf7   : > { %s632_s13 = smov %s634_s16  ;;  %14 = sbr.rel (!%p12_p9) target bundleno = 4 (0x4), region = 76 }
  0xfe   :  { %250 = vsyncpa [#allocation4], 1 }
  0xff   :  { %252 = vsyncpa [#allocation4 + $0x1], 1 }

</bundles_post_ra>
